<compile_context>
chip_gen: v5e
topology: v5e:2x2
jax: 0.10.0
libtpu: 0.0.40
codegen_flags: <defaults>
</compile_context>

<pallas_src>
import jax
import jax.numpy as jnp
from jax.experimental import pallas as pl
from jax.experimental.pallas import tpu as pltpu

EPS = 1e-5


def _residual_block_kernel(xpad_ref, w1b_ref, w2b_ref, widb_ref, bid_ref,
                           g1_ref, b1_ref, g2_ref, b2_ref,
                           fold_ref, expand_ref, out_ref):
    N, HP, KX = xpad_ref.shape          # padded input: (N, H+2, (W+2)*Cin), bf16
    H = HP - 2
    NH, WCo = out_ref.shape             # lane-dense output: (N*H, W*Cout), f32
    Cout = g1_ref.shape[1]
    inv_count = 1.0 / float(NH * (WCo // Cout))

    fold = fold_ref[...]                # (W*Cout, Cout)  : lane -> channel fold (0/1)
    expand = expand_ref[...]            # (Cout, W*Cout)  : channel -> lane broadcast (0/1)

    def conv3(src, wb):
        # src: (N, H+2, K) bf16, wb: (3, K, W*Cout) bf16 banded weights.
        acc = jnp.zeros((NH, WCo), jnp.float32)
        for kh in range(3):
            band = src[:, kh:kh + H, :].reshape(NH, src.shape[2])
            acc = acc + jnp.dot(band, wb[kh], preferred_element_type=jnp.float32)
        return acc

    def bn(acc, gamma, beta):
        # Single-pass batch statistics (biased variance), folded per channel, applied as FMA.
        s = jnp.sum(acc, axis=0, keepdims=True)                 # (1, W*Cout)
        ss = jnp.sum(acc * acc, axis=0, keepdims=True)          # (1, W*Cout)
        mean = jnp.dot(s, fold, preferred_element_type=jnp.float32) * inv_count    # (1, Cout)
        ex2 = jnp.dot(ss, fold, preferred_element_type=jnp.float32) * inv_count    # (1, Cout)
        var = ex2 - mean * mean
        scale = gamma * jax.lax.rsqrt(var + EPS)                # (1, Cout)
        shift = beta - mean * scale                             # (1, Cout)
        scale_t = jnp.dot(scale, expand, preferred_element_type=jnp.float32)       # (1, W*Cout)
        shift_t = jnp.dot(shift, expand, preferred_element_type=jnp.float32)
        return acc * scale_t + shift_t

    xp = xpad_ref[...]                                          # bf16

    # --- stage 1: conv1 -> bn1 -> relu1 ---
    acc1 = conv3(xp, w1b_ref[...])
    y1 = jnp.maximum(bn(acc1, g1_ref[...], b1_ref[...]), 0.0)

    # --- stage 2: conv2 -> bn2 (W-padding is folded into w2b; H-padding via zero rows) ---
    y1b = y1.astype(jnp.bfloat16).reshape(N, H, WCo)
    zrow = jnp.zeros((N, 1, WCo), jnp.bfloat16)
    ypad = jnp.concatenate([zrow, y1b, zrow], axis=1)           # (N, H+2, W*Cout)
    acc2 = conv3(ypad, w2b_ref[...])
    bn2 = bn(acc2, g2_ref[...], b2_ref[...])

    # --- identity branch: 1x1 conv (with bias) on the original input ---
    xband = xp[:, 1:H + 1, :].reshape(NH, KX)
    sid = jnp.dot(xband, widb_ref[...], preferred_element_type=jnp.float32) + bid_ref[...]

    # --- add + relu2, lane-dense store ---
    out_ref[...] = jnp.maximum(bn2 + sid, 0.0)


def _make_banded(wt, W, WI, off):
    """Fold the kernel-width taps of an HWIO conv weight into a banded matmul weight.

    Returns Wb of shape (KH, WI*Cin, W*Cout) with
      Wb[kh, wp*Cin + ci, w*Cout + co] = wt[kh, wp - w + off, ci, co]   (0 <= kw < KW, else 0)
    so that   out_row @ Wb[kh]   contracts input spatial position wp and input channel ci
    against output spatial position w and output channel co.
    """
    KH, KW, Cin, Cout = wt.shape
    wp = jnp.arange(WI)[:, None]
    w = jnp.arange(W)[None, :]
    kw = wp - w + off
    valid = (kw >= 0) & (kw < KW)
    kw_c = jnp.clip(kw, 0, KW - 1)
    blk = wt[:, kw_c]                                           # (KH, WI, W, Cin, Cout)
    blk = jnp.where(valid[None, :, :, None, None], blk, 0.0)
    blk = jnp.transpose(blk, (0, 1, 3, 2, 4))                   # (KH, WI, Cin, W, Cout)
    return blk.reshape(KH, WI * Cin, W * Cout)


def init_params(key, in_channels, out_channels):
    k1, k2, k3, k4 = jax.random.split(key, 4)
    scale1 = 1.0 / jnp.sqrt(in_channels * 9)
    scale2 = 1.0 / jnp.sqrt(out_channels * 9)
    scale3 = 1.0 / jnp.sqrt(in_channels)
    return {
        # conv weights in HWIO layout
        "w1": jax.random.uniform(k1, (3, 3, in_channels, out_channels),
                                 jnp.float32, -scale1, scale1),
        "w2": jax.random.uniform(k2, (3, 3, out_channels, out_channels),
                                 jnp.float32, -scale2, scale2),
        "w_id": jax.random.uniform(k3, (in_channels, out_channels),
                                   jnp.float32, -scale3, scale3),
        "b_id": jax.random.uniform(k4, (out_channels,),
                                   jnp.float32, -scale3, scale3),
        # BatchNorm affine params (PyTorch default init: weight=1, bias=0)
        "gamma1": jnp.ones((out_channels,), jnp.float32),
        "beta1": jnp.zeros((out_channels,), jnp.float32),
        "gamma2": jnp.ones((out_channels,), jnp.float32),
        "beta2": jnp.zeros((out_channels,), jnp.float32),
    }


def residual_block(x_nchw, params):
    """Forward pass matching Residual_Block.forward; x_nchw: (N, Cin, H, W)."""
    x = jnp.transpose(x_nchw, (0, 2, 3, 1)).astype(jnp.float32)     # -> NHWC
    N, H, W, Cin = x.shape
    Cout = params["w1"].shape[-1]

    # Padded input with (W, Cin) folded into the lane dim; bf16 MXU operand.
    xpad = jnp.pad(x, ((0, 0), (1, 1), (1, 1), (0, 0)))
    xpad = xpad.reshape(N, H + 2, (W + 2) * Cin).astype(jnp.bfloat16)

    # Banded matmul weights (built once in the wrapper, bf16 for the MXU).
    w1b = _make_banded(params["w1"], W, W + 2, 0).astype(jnp.bfloat16)       # (3, (W+2)*Cin, W*Cout)
    w2b = _make_banded(params["w2"], W, W, 1).astype(jnp.bfloat16)           # (3, W*Cout,     W*Cout)
    wid4 = jnp.zeros((1, 3, Cin, Cout), jnp.float32).at[0, 1].set(params["w_id"])
    widb = _make_banded(wid4, W, W + 2, 0)[0].astype(jnp.bfloat16)           # ((W+2)*Cin, W*Cout)

    # Per-channel vectors expanded / folded across the lane-dense layout.
    bid_t = jnp.tile(params["b_id"].reshape(1, Cout), (1, W)).astype(jnp.float32)   # (1, W*Cout)
    lane_c = jnp.arange(W * Cout) % Cout
    fold = (lane_c[:, None] == jnp.arange(Cout)[None, :]).astype(jnp.float32)       # (W*Cout, Cout)
    expand = fold.T                                                                  # (Cout, W*Cout)

    vmem = pl.BlockSpec(memory_space=pltpu.MemorySpace.VMEM)

    out2d = pl.pallas_call(
        _residual_block_kernel,
        out_shape=jax.ShapeDtypeStruct((N * H, W * Cout), jnp.float32),
        in_specs=[vmem] * 11,
        out_specs=vmem,
    )(xpad, w1b, w2b, widb, bid_t,
      params["gamma1"].reshape(1, Cout), params["beta1"].reshape(1, Cout),
      params["gamma2"].reshape(1, Cout), params["beta2"].reshape(1, Cout),
      fold, expand)

    out = out2d.reshape(N, H, W, Cout)
    return jnp.transpose(out, (0, 3, 1, 2))                        # back to NCHW


if __name__ == "__main__":
    key = jax.random.PRNGKey(0)
    k_x, k_p = jax.random.split(key)

    in_channels, out_channels = 4, 8
    x = jax.random.normal(k_x, (2, in_channels, 16, 16), jnp.float32)  # NCHW
    params = init_params(k_p, in_channels, out_channels)

    fwd = jax.jit(residual_block)
    out = fwd(x, params)
    out = jax.block_until_ready(out)
    assert out.shape == (2, out_channels, 16, 16)
    print("KERNEL_OK")
</pallas_src>

<mosaic_0001>
module attributes {stable_mosaic.version = 11 : i64} {
  func.func @_residual_block_kernel(%arg0: memref<2x18x72xbf16, #tpu.memory_space<vmem>>, %arg1: memref<3x72x128xbf16, #tpu.memory_space<vmem>>, %arg2: memref<3x128x128xbf16, #tpu.memory_space<vmem>>, %arg3: memref<72x128xbf16, #tpu.memory_space<vmem>>, %arg4: memref<1x128xf32, #tpu.memory_space<vmem>>, %arg5: memref<1x8xf32, #tpu.memory_space<vmem>>, %arg6: memref<1x8xf32, #tpu.memory_space<vmem>>, %arg7: memref<1x8xf32, #tpu.memory_space<vmem>>, %arg8: memref<1x8xf32, #tpu.memory_space<vmem>>, %arg9: memref<128x8xf32, #tpu.memory_space<vmem>>, %arg10: memref<8x128xf32, #tpu.memory_space<vmem>>, %arg11: memref<32x128xf32, #tpu.memory_space<vmem>>) attributes {dimension_semantics = [], scalar_prefetch = 0 : i64, scratch_operands = 0 : i64, tpu.core_type = #tpu.core_type<tc>} {
    %c0 = arith.constant 0 : index
    %c0_0 = arith.constant 0 : index
    %0 = vector.load %arg9[%c0, %c0_0] : memref<128x8xf32, #tpu.memory_space<vmem>>, vector<128x8xf32>
    %c0_1 = arith.constant 0 : index
    %c0_2 = arith.constant 0 : index
    %1 = vector.load %arg10[%c0_1, %c0_2] : memref<8x128xf32, #tpu.memory_space<vmem>>, vector<8x128xf32>
    %c0_3 = arith.constant 0 : index
    %c0_4 = arith.constant 0 : index
    %c0_5 = arith.constant 0 : index
    %2 = vector.load %arg0[%c0_3, %c0_4, %c0_5] : memref<2x18x72xbf16, #tpu.memory_space<vmem>>, vector<2x18x72xbf16>
    %c0_6 = arith.constant 0 : index
    %c0_7 = arith.constant 0 : index
    %c0_8 = arith.constant 0 : index
    %3 = vector.load %arg1[%c0_6, %c0_7, %c0_8] : memref<3x72x128xbf16, #tpu.memory_space<vmem>>, vector<3x72x128xbf16>
    %cst = arith.constant 0.000000e+00 : f32
    %4 = vector.broadcast %cst : f32 to vector<32x128xf32>
    %5 = vector.extract_strided_slice %2 {offsets = [0, 0, 0], sizes = [2, 16, 72], strides = [1, 1, 1]} : vector<2x18x72xbf16> to vector<2x16x72xbf16>
    %6 = vector.shape_cast %5 : vector<2x16x72xbf16> to vector<32x72xbf16>
    %7 = vector.extract_strided_slice %3 {offsets = [0, 0, 0], sizes = [1, 72, 128], strides = [1, 1, 1]} : vector<3x72x128xbf16> to vector<1x72x128xbf16>
    %8 = vector.shape_cast %7 : vector<1x72x128xbf16> to vector<72x128xbf16>
    %cst_9 = arith.constant dense<0.000000e+00> : vector<32x128xf32>
    %9 = tpu.matmul %6, %8, %cst_9 {dimension_numbers = #tpu.dot_dimension_numbers<[1], [0], [0], [1], [0, 0, 1, 1], [], []>} : vector<32x72xbf16>, vector<72x128xbf16>, vector<32x128xf32> -> vector<32x128xf32>
    %10 = arith.addf %4, %9 : vector<32x128xf32>
    %11 = vector.extract_strided_slice %2 {offsets = [0, 1, 0], sizes = [2, 16, 72], strides = [1, 1, 1]} : vector<2x18x72xbf16> to vector<2x16x72xbf16>
    %12 = vector.shape_cast %11 : vector<2x16x72xbf16> to vector<32x72xbf16>
    %13 = vector.extract_strided_slice %3 {offsets = [1, 0, 0], sizes = [1, 72, 128], strides = [1, 1, 1]} : vector<3x72x128xbf16> to vector<1x72x128xbf16>
    %14 = vector.shape_cast %13 : vector<1x72x128xbf16> to vector<72x128xbf16>
    %cst_10 = arith.constant dense<0.000000e+00> : vector<32x128xf32>
    %15 = tpu.matmul %12, %14, %cst_10 {dimension_numbers = #tpu.dot_dimension_numbers<[1], [0], [0], [1], [0, 0, 1, 1], [], []>} : vector<32x72xbf16>, vector<72x128xbf16>, vector<32x128xf32> -> vector<32x128xf32>
    %16 = arith.addf %10, %15 : vector<32x128xf32>
    %17 = vector.extract_strided_slice %2 {offsets = [0, 2, 0], sizes = [2, 16, 72], strides = [1, 1, 1]} : vector<2x18x72xbf16> to vector<2x16x72xbf16>
    %18 = vector.shape_cast %17 : vector<2x16x72xbf16> to vector<32x72xbf16>
    %19 = vector.extract_strided_slice %3 {offsets = [2, 0, 0], sizes = [1, 72, 128], strides = [1, 1, 1]} : vector<3x72x128xbf16> to vector<1x72x128xbf16>
    %20 = vector.shape_cast %19 : vector<1x72x128xbf16> to vector<72x128xbf16>
    %cst_11 = arith.constant dense<0.000000e+00> : vector<32x128xf32>
    %21 = tpu.matmul %18, %20, %cst_11 {dimension_numbers = #tpu.dot_dimension_numbers<[1], [0], [0], [1], [0, 0, 1, 1], [], []>} : vector<32x72xbf16>, vector<72x128xbf16>, vector<32x128xf32> -> vector<32x128xf32>
    %22 = arith.addf %16, %21 : vector<32x128xf32>
    %c0_12 = arith.constant 0 : index
    %c0_13 = arith.constant 0 : index
    %23 = vector.load %arg5[%c0_12, %c0_13] : memref<1x8xf32, #tpu.memory_space<vmem>>, vector<1x8xf32>
    %c0_14 = arith.constant 0 : index
    %c0_15 = arith.constant 0 : index
    %24 = vector.load %arg6[%c0_14, %c0_15] : memref<1x8xf32, #tpu.memory_space<vmem>>, vector<1x8xf32>
    %cst_16 = arith.constant dense<0.000000e+00> : vector<128xf32>
    %25 = vector.multi_reduction <add>, %22, %cst_16 [0] : vector<32x128xf32> to vector<128xf32>
    %26 = vector.shape_cast %25 : vector<128xf32> to vector<1x128xf32>
    %27 = arith.mulf %22, %22 : vector<32x128xf32>
    %cst_17 = arith.constant dense<0.000000e+00> : vector<128xf32>
    %28 = vector.multi_reduction <add>, %27, %cst_17 [0] : vector<32x128xf32> to vector<128xf32>
    %29 = vector.shape_cast %28 : vector<128xf32> to vector<1x128xf32>
    %cst_18 = arith.constant dense<0.000000e+00> : vector<1x8xf32>
    %30 = tpu.matmul %26, %0, %cst_18 {dimension_numbers = #tpu.dot_dimension_numbers<[1], [0], [0], [1], [0, 0, 1, 1], [], []>} : vector<1x128xf32>, vector<128x8xf32>, vector<1x8xf32> -> vector<1x8xf32>
    %cst_19 = arith.constant 0.001953125 : f32
    %31 = vector.broadcast %cst_19 : f32 to vector<1x8xf32>
    %32 = arith.mulf %30, %31 : vector<1x8xf32>
    %cst_20 = arith.constant dense<0.000000e+00> : vector<1x8xf32>
    %33 = tpu.matmul %29, %0, %cst_20 {dimension_numbers = #tpu.dot_dimension_numbers<[1], [0], [0], [1], [0, 0, 1, 1], [], []>} : vector<1x128xf32>, vector<128x8xf32>, vector<1x8xf32> -> vector<1x8xf32>
    %cst_21 = arith.constant 0.001953125 : f32
    %34 = vector.broadcast %cst_21 : f32 to vector<1x8xf32>
    %35 = arith.mulf %33, %34 : vector<1x8xf32>
    %36 = arith.mulf %32, %32 : vector<1x8xf32>
    %37 = arith.subf %35, %36 : vector<1x8xf32>
    %cst_22 = arith.constant 9.99999974E-6 : f32
    %38 = vector.broadcast %cst_22 : f32 to vector<1x8xf32>
    %39 = arith.addf %37, %38 : vector<1x8xf32>
    %40 = math.rsqrt %39 : vector<1x8xf32>
    %41 = arith.mulf %23, %40 : vector<1x8xf32>
    %42 = arith.mulf %32, %41 : vector<1x8xf32>
    %43 = arith.subf %24, %42 : vector<1x8xf32>
    %cst_23 = arith.constant dense<0.000000e+00> : vector<1x128xf32>
    %44 = tpu.matmul %41, %1, %cst_23 {dimension_numbers = #tpu.dot_dimension_numbers<[1], [0], [0], [1], [0, 0, 1, 1], [], []>} : vector<1x8xf32>, vector<8x128xf32>, vector<1x128xf32> -> vector<1x128xf32>
    %cst_24 = arith.constant dense<0.000000e+00> : vector<1x128xf32>
    %45 = tpu.matmul %43, %1, %cst_24 {dimension_numbers = #tpu.dot_dimension_numbers<[1], [0], [0], [1], [0, 0, 1, 1], [], []>} : vector<1x8xf32>, vector<8x128xf32>, vector<1x128xf32> -> vector<1x128xf32>
    %46 = vector.broadcast %44 : vector<1x128xf32> to vector<32x128xf32>
    %47 = arith.mulf %22, %46 : vector<32x128xf32>
    %48 = vector.broadcast %45 : vector<1x128xf32> to vector<32x128xf32>
    %49 = arith.addf %47, %48 : vector<32x128xf32>
    %cst_25 = arith.constant 0.000000e+00 : f32
    %50 = vector.broadcast %cst_25 : f32 to vector<32x128xf32>
    %51 = arith.maximumf %49, %50 : vector<32x128xf32>
    %52 = arith.truncf %51 : vector<32x128xf32> to vector<32x128xbf16>
    %53 = vector.shape_cast %52 : vector<32x128xbf16> to vector<2x16x128xbf16>
    %cst_26 = arith.constant 0.000000e+00 : bf16
    %54 = vector.broadcast %cst_26 : bf16 to vector<2x1x128xbf16>
    %55 = tpu.concatenate %54, %53, %54 in 1 : vector<2x1x128xbf16>, vector<2x16x128xbf16>, vector<2x1x128xbf16> -> vector<2x18x128xbf16>
    %c0_27 = arith.constant 0 : index
    %c0_28 = arith.constant 0 : index
    %c0_29 = arith.constant 0 : index
    %56 = vector.load %arg2[%c0_27, %c0_28, %c0_29] : memref<3x128x128xbf16, #tpu.memory_space<vmem>>, vector<3x128x128xbf16>
    %cst_30 = arith.constant 0.000000e+00 : f32
    %57 = vector.broadcast %cst_30 : f32 to vector<32x128xf32>
    %58 = vector.extract_strided_slice %55 {offsets = [0, 0, 0], sizes = [2, 16, 128], strides = [1, 1, 1]} : vector<2x18x128xbf16> to vector<2x16x128xbf16>
    %59 = vector.shape_cast %58 : vector<2x16x128xbf16> to vector<32x128xbf16>
    %60 = vector.extract_strided_slice %56 {offsets = [0, 0, 0], sizes = [1, 128, 128], strides = [1, 1, 1]} : vector<3x128x128xbf16> to vector<1x128x128xbf16>
    %61 = vector.shape_cast %60 : vector<1x128x128xbf16> to vector<128x128xbf16>
    %cst_31 = arith.constant dense<0.000000e+00> : vector<32x128xf32>
    %62 = tpu.matmul %59, %61, %cst_31 {dimension_numbers = #tpu.dot_dimension_numbers<[1], [0], [0], [1], [0, 0, 1, 1], [], []>} : vector<32x128xbf16>, vector<128x128xbf16>, vector<32x128xf32> -> vector<32x128xf32>
    %63 = arith.addf %57, %62 : vector<32x128xf32>
    %64 = vector.extract_strided_slice %55 {offsets = [0, 1, 0], sizes = [2, 16, 128], strides = [1, 1, 1]} : vector<2x18x128xbf16> to vector<2x16x128xbf16>
    %65 = vector.shape_cast %64 : vector<2x16x128xbf16> to vector<32x128xbf16>
    %66 = vector.extract_strided_slice %56 {offsets = [1, 0, 0], sizes = [1, 128, 128], strides = [1, 1, 1]} : vector<3x128x128xbf16> to vector<1x128x128xbf16>
    %67 = vector.shape_cast %66 : vector<1x128x128xbf16> to vector<128x128xbf16>
    %cst_32 = arith.constant dense<0.000000e+00> : vector<32x128xf32>
    %68 = tpu.matmul %65, %67, %cst_32 {dimension_numbers = #tpu.dot_dimension_numbers<[1], [0], [0], [1], [0, 0, 1, 1], [], []>} : vector<32x128xbf16>, vector<128x128xbf16>, vector<32x128xf32> -> vector<32x128xf32>
    %69 = arith.addf %63, %68 : vector<32x128xf32>
    %70 = vector.extract_strided_slice %55 {offsets = [0, 2, 0], sizes = [2, 16, 128], strides = [1, 1, 1]} : vector<2x18x128xbf16> to vector<2x16x128xbf16>
    %71 = vector.shape_cast %70 : vector<2x16x128xbf16> to vector<32x128xbf16>
    %72 = vector.extract_strided_slice %56 {offsets = [2, 0, 0], sizes = [1, 128, 128], strides = [1, 1, 1]} : vector<3x128x128xbf16> to vector<1x128x128xbf16>
    %73 = vector.shape_cast %72 : vector<1x128x128xbf16> to vector<128x128xbf16>
    %cst_33 = arith.constant dense<0.000000e+00> : vector<32x128xf32>
    %74 = tpu.matmul %71, %73, %cst_33 {dimension_numbers = #tpu.dot_dimension_numbers<[1], [0], [0], [1], [0, 0, 1, 1], [], []>} : vector<32x128xbf16>, vector<128x128xbf16>, vector<32x128xf32> -> vector<32x128xf32>
    %75 = arith.addf %69, %74 : vector<32x128xf32>
    %c0_34 = arith.constant 0 : index
    %c0_35 = arith.constant 0 : index
    %76 = vector.load %arg7[%c0_34, %c0_35] : memref<1x8xf32, #tpu.memory_space<vmem>>, vector<1x8xf32>
    %c0_36 = arith.constant 0 : index
    %c0_37 = arith.constant 0 : index
    %77 = vector.load %arg8[%c0_36, %c0_37] : memref<1x8xf32, #tpu.memory_space<vmem>>, vector<1x8xf32>
    %cst_38 = arith.constant dense<0.000000e+00> : vector<128xf32>
    %78 = vector.multi_reduction <add>, %75, %cst_38 [0] : vector<32x128xf32> to vector<128xf32>
    %79 = vector.shape_cast %78 : vector<128xf32> to vector<1x128xf32>
    %80 = arith.mulf %75, %75 : vector<32x128xf32>
    %cst_39 = arith.constant dense<0.000000e+00> : vector<128xf32>
    %81 = vector.multi_reduction <add>, %80, %cst_39 [0] : vector<32x128xf32> to vector<128xf32>
    %82 = vector.shape_cast %81 : vector<128xf32> to vector<1x128xf32>
    %cst_40 = arith.constant dense<0.000000e+00> : vector<1x8xf32>
    %83 = tpu.matmul %79, %0, %cst_40 {dimension_numbers = #tpu.dot_dimension_numbers<[1], [0], [0], [1], [0, 0, 1, 1], [], []>} : vector<1x128xf32>, vector<128x8xf32>, vector<1x8xf32> -> vector<1x8xf32>
    %cst_41 = arith.constant 0.001953125 : f32
    %84 = vector.broadcast %cst_41 : f32 to vector<1x8xf32>
    %85 = arith.mulf %83, %84 : vector<1x8xf32>
    %cst_42 = arith.constant dense<0.000000e+00> : vector<1x8xf32>
    %86 = tpu.matmul %82, %0, %cst_42 {dimension_numbers = #tpu.dot_dimension_numbers<[1], [0], [0], [1], [0, 0, 1, 1], [], []>} : vector<1x128xf32>, vector<128x8xf32>, vector<1x8xf32> -> vector<1x8xf32>
    %cst_43 = arith.constant 0.001953125 : f32
    %87 = vector.broadcast %cst_43 : f32 to vector<1x8xf32>
    %88 = arith.mulf %86, %87 : vector<1x8xf32>
    %89 = arith.mulf %85, %85 : vector<1x8xf32>
    %90 = arith.subf %88, %89 : vector<1x8xf32>
    %cst_44 = arith.constant 9.99999974E-6 : f32
    %91 = vector.broadcast %cst_44 : f32 to vector<1x8xf32>
    %92 = arith.addf %90, %91 : vector<1x8xf32>
    %93 = math.rsqrt %92 : vector<1x8xf32>
    %94 = arith.mulf %76, %93 : vector<1x8xf32>
    %95 = arith.mulf %85, %94 : vector<1x8xf32>
    %96 = arith.subf %77, %95 : vector<1x8xf32>
    %cst_45 = arith.constant dense<0.000000e+00> : vector<1x128xf32>
    %97 = tpu.matmul %94, %1, %cst_45 {dimension_numbers = #tpu.dot_dimension_numbers<[1], [0], [0], [1], [0, 0, 1, 1], [], []>} : vector<1x8xf32>, vector<8x128xf32>, vector<1x128xf32> -> vector<1x128xf32>
    %cst_46 = arith.constant dense<0.000000e+00> : vector<1x128xf32>
    %98 = tpu.matmul %96, %1, %cst_46 {dimension_numbers = #tpu.dot_dimension_numbers<[1], [0], [0], [1], [0, 0, 1, 1], [], []>} : vector<1x8xf32>, vector<8x128xf32>, vector<1x128xf32> -> vector<1x128xf32>
    %99 = vector.broadcast %97 : vector<1x128xf32> to vector<32x128xf32>
    %100 = arith.mulf %75, %99 : vector<32x128xf32>
    %101 = vector.broadcast %98 : vector<1x128xf32> to vector<32x128xf32>
    %102 = arith.addf %100, %101 : vector<32x128xf32>
    %103 = vector.extract_strided_slice %2 {offsets = [0, 1, 0], sizes = [2, 16, 72], strides = [1, 1, 1]} : vector<2x18x72xbf16> to vector<2x16x72xbf16>
    %104 = vector.shape_cast %103 : vector<2x16x72xbf16> to vector<32x72xbf16>
    %c0_47 = arith.constant 0 : index
    %c0_48 = arith.constant 0 : index
    %105 = vector.load %arg3[%c0_47, %c0_48] : memref<72x128xbf16, #tpu.memory_space<vmem>>, vector<72x128xbf16>
    %cst_49 = arith.constant dense<0.000000e+00> : vector<32x128xf32>
    %106 = tpu.matmul %104, %105, %cst_49 {dimension_numbers = #tpu.dot_dimension_numbers<[1], [0], [0], [1], [0, 0, 1, 1], [], []>} : vector<32x72xbf16>, vector<72x128xbf16>, vector<32x128xf32> -> vector<32x128xf32>
    %c0_50 = arith.constant 0 : index
    %c0_51 = arith.constant 0 : index
    %107 = vector.load %arg4[%c0_50, %c0_51] : memref<1x128xf32, #tpu.memory_space<vmem>>, vector<1x128xf32>
    %108 = vector.broadcast %107 : vector<1x128xf32> to vector<32x128xf32>
    %109 = arith.addf %106, %108 : vector<32x128xf32>
    %110 = arith.addf %102, %109 : vector<32x128xf32>
    %cst_52 = arith.constant 0.000000e+00 : f32
    %111 = vector.broadcast %cst_52 : f32 to vector<32x128xf32>
    %112 = arith.maximumf %110, %111 : vector<32x128xf32>
    %c0_53 = arith.constant 0 : index
    %c0_54 = arith.constant 0 : index
    %113 = vector.load %arg11[%c0_53, %c0_54] : memref<32x128xf32, #tpu.memory_space<vmem>>, vector<32x128xf32>
    tpu.vector_store %arg11[%c0_53, %c0_54], %112 {strides = array<i32>} : memref<32x128xf32, #tpu.memory_space<vmem>>, vector<32x128xf32>,
    return
  }
}

</mosaic_0001>

<bundles_post_ra>
// kernel: residual_block.1
= control target key start
LH: loop header
LB: loop body
LE: loop exit
PB: predicated region body
PF: predicated region fallthrough
CT: control target
= control target key end

     0   :  { %vm180_vm0 = vcmask 1043456   ;;  %vm89_vm1 = vsmask.f32 3328  ;;  %vm270_vm2 = vcmask 1042432   ;;  %vm271_vm3 = vcmask 1046532   ;;  %s1788_s1 = inlined_call_operand.vmem [shape: bf16[3,72,128], index: 1, kind: input, shape index: {}]   ;;  %s1789_s0 = inlined_call_operand.vmem [shape: bf16[2,18,72], index: 0, kind: input, shape index: {}]   ;;  %s1790_s9 = inlined_call_operand.vmem [shape: f32[128,8], index: 9, kind: input, shape index: {}]   ;;  %s1791_s10 = inlined_call_operand.vmem [shape: f32[8,128], index: 10, kind: input, shape index: {}]   ;;  %s1792_s2 = inlined_call_operand.vmem [shape: bf16[3,128,128], index: 2, kind: input, shape index: {}]   ;;  %s1793_s5 = inlined_call_operand.vmem [shape: f32[1,8], index: 5, kind: input, shape index: {}]   ;;  %s1794_s6 = inlined_call_operand.vmem [shape: f32[1,8], index: 6, kind: input, shape index: {}]   ;;  %s1795_s3 = inlined_call_operand.vmem [shape: bf16[72,128], index: 3, kind: input, shape index: {}]   ;;  %s1796_s4 = inlined_call_operand.vmem [shape: f32[1,128], index: 4, kind: input, shape index: {}]   ;;  %s1797_s7 = inlined_call_operand.vmem [shape: f32[1,8], index: 7, kind: input, shape index: {}]   ;;  %s1798_s8 = inlined_call_operand.vmem [shape: f32[1,8], index: 8, kind: input, shape index: {}]   ;;  %s1799_s11 = inlined_call_operand.vmem [shape: f32[32,128], index: 11, kind: output, shape index: {}]  }
   0x1   :  { %v79_v0 = vld [vmem:[%s1788_s1 + $0x44] sm:$0xf]  ;;  %v70_v1 = vld [vmem:[%s1788_s1 + $0x20] sm:$0xf]  ;;  %v88_v2 = vld [vmem:[%s1788_s1 + $0x68] sm:$0xf] }
   0x2   :  { %v163_v3 = vunpack.c.l.b16 %v79_v0  ;;  %v230_v4 = vunpack.c.l.b16 %v70_v1  ;;  %v310_v5 = vunpack.c.l.b16 %v88_v2  ;;  %v1234_v9 = vld [vmem:[%s1788_s1 + $0x3c] sm:$0xff]  ;;  %v57_v15 = vld [vmem:[%s1789_s0 + $0x4] sm:$0xf]  ;;  %v58_v16 = vld [vmem:[%s1789_s0 + $0x8] sm:$0x1]  ;;  %vm173_vm7 = vcmask 588800  }
   0x3   :  { %v1230_v10 = vld [vmem:[%s1788_s1 + $0x18] sm:$0xff]  ;;  %v56_v14 = vld [vmem:[%s1789_s0] sm:$0xf]  ;;  %v102_v20 = vshll.u32 %v57_v15, 16  ;;  %v106_v21 = vshrl.u32 %v57_v15, 16  ;;  %v112_v22 = vshll.u32 %v58_v16, 16  ;;  %vm1369_vm5 = vmor %vm270_vm2, %vm271_vm3 }
   0x4   :  { %v168_v6 = vpack.c.b16 %v163_v3, %v163_v3  ;;  %v235_v7 = vpack.c.b16 %v230_v4, %v230_v4  ;;  %v315_v8 = vpack.c.b16 %v310_v5, %v310_v5  ;;  %v93_v17 = vshrl.u32 %v56_v14, 16  ;;  %v1238_v19 = vld [vmem:[%s1788_s1 + $0x60] sm:$0xff]  ;;  %v1233_v26 = vld [vmem:[%s1788_s1 + $0x34] sm:$0xff]  ;;  %v1376_v33 = vld [vmem:[%s1789_s0 + $0xc] sm:$0xf] }
   0x5   :  { %v96_v18 = vshll.u32 %v56_v14, 16  ;;  %vm90_vm4 = vsmask.f32 7440  ;;  %v275_v25 = vrot.slane %v57_v15, 5  ;;  %v104_v27 = vrot.slane %v102_v20, 5  ;;  %v1229_v30 = vld [vmem:[%s1788_s1 + $0x10] sm:$0xff] }
   0x6   :  { %v182_v11 = vsel %vm180_vm0, %v168_v6, 0  ;;  %v247_v12 = vsel %vm180_vm0, %v235_v7, 0  ;;  %v327_v13 = vsel %vm180_vm0, %v315_v8, 0  ;;  %v95_v23 = vrot.slane %v93_v17, 4  ;;  %v1237_v34 = vld [vmem:[%s1788_s1 + $0x58] sm:$0xff]  ;;  %vm1383_vm6 = vmor %vm89_vm1, %vm90_vm4  ;;  %v1232_v45 = vld [vmem:[%s1788_s1 + $0x2c] sm:$0xff] }
   0x7   :  { %187 = vmatpush.bf16.msra.mxu0 %v182_v11  ;;  %252 = vmatpush.bf16.msra.mxu1 %v247_v12  ;;  %v98_v24 = vrot.slane %v96_v18, 5  ;;  %v108_v28 = vrot.slane %v106_v21, 4  ;;  %v1087_v29 = vrot.slane %v56_v14, 9  ;;  %v114_v37 = vrot.slane %v112_v22, 5  ;;  %v60_v40 = vld [vmem:[%s1789_s0 + $0x10] sm:$0xf] }
   0x8   :  { %332 = vmatpush.bf16.msra.mxu2 %v327_v13  ;;  %v277_v38 = vrot.slane %v275_v25, 4  ;;  %v278_v39 = vrot.slane %v58_v16, 5  ;;  %v117_v44 = vshrl.u32 %v1376_v33, 16  ;;  %v1228_v46 = vld [vmem:[%s1788_s1 + $0x8] sm:$0xff]  ;;  %v120_v48 = vshll.u32 %v1376_v33, 16  ;;  %v1236_v51 = vld [vmem:[%s1788_s1 + $0x50] sm:$0xff] }
   0x9   :  { %v99_v31 = vor.u32 %v98_v24, %v95_v23  ;;  %v109_v36 = vor.u32 %v108_v28, %v104_v27  ;;  %v276_v43 = vsel %vm1369_vm5, %v1087_v29, %v275_v25  ;;  %v126_v49 = vshll.u32 %v60_v40, 16  ;;  %v1231_v58 = vld [vmem:[%s1788_s1 + $0x24] sm:$0xff]  ;;  %v61_v1 = vld [vmem:[%s1789_s0 + $0x14] sm:$0x1]  ;;  %v1226_v24 = vld [vmem:[%s1789_s0 + $0xc] sm:$0xff] }
   0xa   :  { %v130_v50 = vshrl.u32 %v60_v40, 16  ;;  %v279_v53 = vsel %vm1369_vm5, %v277_v38, %v278_v39  ;;  %v287_v56 = vunpack.c.l.b16 %v276_v43  ;;  %v119_v57 = vrot.slane %v117_v44, 4  ;;  %v1227_v59 = vld [vmem:[%s1788_s1] sm:$0xff]  ;;  %v1235_v0 = vld [vmem:[%s1788_s1 + $0x48] sm:$0xff]  ;;  %v1540_v44 = vld [vmem:[%s1790_s9 + $0x10] sm:$0xff] }
   0xb   :  { %188 = vmatpush.bf16.msra.mxu0 %v1234_v9  ;;  %253 = vmatpush.bf16.msra.mxu1 %v1230_v10  ;;  %v100_v41 = vrot.slane %v99_v31, 4  ;;  %v110_v42 = vrot.slane %v109_v36, 4  ;;  %v288_v60 = vunpack.c.l.b16 %v279_v53  ;;  %v122_v61 = vrot.slane %v120_v48, 5  ;;  %v1225_v3 = vld [vmem:[%s1789_s0] sm:$0xff]  ;;  %v1465_v28 = vld [vmem:[%s1790_s9 + $0x68] sm:$0xff]  ;;  %v1486_v31 = vld [vmem:[%s1790_s9 + $0x50] sm:$0xff] }
   0xc   :  { %333 = vmatpush.bf16.msra.mxu2 %v1238_v19  ;;  %v128_v62 = vrot.slane %v126_v49, 5  ;;  %v132_v63 = vrot.slane %v130_v50, 4  ;;  %v136_v7 = vshll.u32 %v61_v1, 16  ;;  %v282_v8 = vrot.slane %v60_v40, 5  ;;  %v1472_v29 = vld [vmem:[%s1790_s9 + $0x60] sm:$0xff]  ;;  %v1493_v32 = vld [vmem:[%s1790_s9 + $0x48] sm:$0xff] }
   0xd   :  { %v105_v47 = vsel %vm1383_vm6, %v100_v41, %v104_v27  ;;  %v115_v52 = vsel %vm1383_vm6, %v110_v42, %v114_v37  ;;  %v291_v4 = vpack.c.b16 %v288_v60, %v287_v56  ;;  %v123_v5 = vor.u32 %v122_v61, %v119_v57  ;;  %v1458_v27 = vld [vmem:[%s1790_s9 + $0x70] sm:$0xff]  ;;  %v1507_v36 = vld [vmem:[%s1790_s9 + $0x38] sm:$0xff]  ;;  %v1521_v38 = vld [vmem:[%s1790_s9 + $0x28] sm:$0xff] }
   0xe   :  { %v140_v54 = vunpack.c.l.b16 %v105_v47  ;;  %v141_v55 = vunpack.c.l.b16 %v115_v52  ;;  %v133_v6 = vor.u32 %v132_v63, %v128_v62  ;;  %v138_v11 = vrot.slane %v136_v7, 5  ;;  %v1514_v37 = vld [vmem:[%s1790_s9 + $0x30] sm:$0xff]  ;;  %v1528_v39 = vld [vmem:[%s1790_s9 + $0x20] sm:$0xff]  ;;  %v1533_v40 = vld [vmem:[%s1790_s9 + $0x18] sm:$0xff] }
   0xf   :  { %189 = vmatpush.bf16.msra.mxu0 %v1233_v26  ;;  %254 = vmatpush.bf16.msra.mxu1 %v1229_v30  ;;  %v124_v9 = vrot.slane %v123_v5, 4  ;;  %v1088_v12 = vrot.slane %v1376_v33, 9  ;;  %v284_v13 = vrot.slane %v282_v8, 4  ;;  %v285_v14 = vrot.slane %v61_v1, 5  ;;  %v1451_v26 = vld [vmem:[%s1790_s9 + $0x78] sm:$0xff]  ;;  %v1500_v33 = vld [vmem:[%s1790_s9 + $0x40] sm:$0xff] }
  0x10   :  { %334 = vmatpush.bf16.msra.mxu2 %v1237_v34  ;;  %v1421_v2 = vpack.c.b16 %v141_v55, %v140_v54  ;;  %v134_v10 = vrot.slane %v133_v6, 4  ;;  %376 = vmatpush.msra.mxu3 %v1451_v26  ;;  %v1479_v30 = vld [vmem:[%s1790_s9 + $0x58] sm:$0xff]  ;;  %vm434_vm11 = vcmask 64512   ;;  %vm527_vm12 = vcmask 1040384  }
  0x11   :  { %v129_v15 = vsel %vm1383_vm6, %v124_v9, %v128_v62  ;;  %v283_v17 = vsel %vm1369_vm5, %v1088_v12, %v282_v8  ;;  %v286_v18 = vsel %vm1369_vm5, %v284_v13, %v285_v14  ;;  %vm528_vm13 = vsmask.f32 256 }
  0x12   :  { %v139_v16 = vsel %vm1383_vm6, %v134_v10, %v138_v11  ;;  %v142_v19 = vunpack.c.l.b16 %v129_v15  ;;  %v289_v21 = vunpack.c.l.b16 %v283_v17  ;;  %v290_v22 = vunpack.c.l.b16 %v286_v18  ;;  %377 = vmatpush.msra.mxu3 %v1458_v27  ;;  %vm1702_vm14 = vmand %vm527_vm12, %vm528_vm13 }
  0x13   :  { %190 = vmatpush.bf16.msra.mxu0 %v1232_v45  ;;  %255 = vmatpush.bf16.msra.mxu1 %v1228_v46  ;;  %v143_v20 = vunpack.c.l.b16 %v139_v16  ;;  %v1547_v45 = vld [vmem:[%s1790_s9 + $0x8] sm:$0xff]  ;;  %v1554_v46 = vld [vmem:[%s1790_s9] sm:$0xff]  ;;  %vm747_vm15 = vcmask 1046528   ;;  %vm582_vm1 = vsmask.f32 7424 }
  0x14   :  { %335 = vmatpush.bf16.msra.mxu2 %v1236_v51  ;;  %v292_v25 = vpack.c.b16 %v290_v22, %v289_v21  ;;  %378 = vmatpush.msra.mxu3 %v1465_v28  ;;  %v1599_v21 = vld [vmem:[%s1791_s10] sm:$0xff] }
  0x15   :  { %v1439_v23 = vpack.c.b16 %v143_v20, %v142_v19 }
  0x16   :  { %379 = vmatpush.msra.mxu3 %v1472_v29 }
  0x17   :  { %191 = vmatpush.bf16.msra.mxu0 %v1231_v58  ;;  %256 = vmatpush.bf16.msra.mxu1 %v1227_v59 }
  0x18   :  { %336 = vmatpush.bf16.msra.mxu2 %v1235_v0  ;;  %380 = vmatpush.msra.mxu3 %v1479_v30 }
  0x1a   :  { %1059 = vmatmul.msk.bf16.vlgmr.msra.gmra.mxu0 %vm173_vm7, %v1421_v2  ;;  %1085 = vmatmul.msk.bf16.vlgmr.msra.gmra.mxu1 %vm173_vm7, %v1225_v3 }
  0x1b   :  { %1105 = vmatmul.msk.bf16.vlgmr.msra.gmra.mxu2 %vm173_vm7, %v291_v4  ;;  %397 = vmatpush.msrb.mxu0 %v1451_v26 }
  0x1c   :  { %381 = vmatpush.msra.mxu3 %v1486_v31 }
  0x1d   :  { %398 = vmatpush.msrb.mxu0 %v1458_v27 }
  0x1e   :  { %382 = vmatpush.msra.mxu3 %v1493_v32 }
  0x1f   :  { %399 = vmatpush.msrb.mxu0 %v1465_v28 }
  0x20   :  { %383 = vmatpush.msra.mxu3 %v1500_v33 }
  0x21   :  { %400 = vmatpush.msrb.mxu0 %v1472_v29 }
  0x22   :  { %384 = vmatpush.msra.mxu3 %v1507_v36 }
  0x23   :  { %401 = vmatpush.msrb.mxu0 %v1479_v30 }
  0x24   :  { %385 = vmatpush.msra.mxu3 %v1514_v37 }
  0x25   :  { %402 = vmatpush.msrb.mxu0 %v1486_v31 }
  0x26   :  { %386 = vmatpush.msra.mxu3 %v1521_v38 }
  0x27   :  { %403 = vmatpush.msrb.mxu0 %v1493_v32 }
  0x28   :  { %387 = vmatpush.msra.mxu3 %v1528_v39 }
  0x29   :  { %404 = vmatpush.msrb.mxu0 %v1500_v33 }
  0x2a   :  { %1060 = vmatmul.msk.bf16.gmra.mxu0 %vm173_vm7, %v1439_v23  ;;  %1086 = vmatmul.msk.bf16.gmra.mxu1 %vm173_vm7, %v1226_v24 }
  0x2b   :  { %1106 = vmatmul.msk.bf16.gmra.mxu2 %vm173_vm7, %v292_v25  ;;  %405 = vmatpush.msrb.mxu0 %v1507_v36 }
  0x2c   :  { %388 = vmatpush.msra.mxu3 %v1533_v40 }
  0x2d   :  { %406 = vmatpush.msrb.mxu0 %v1514_v37 }
  0x2e   :  { %389 = vmatpush.msra.mxu3 %v1540_v44 }
  0x2f   :  { %407 = vmatpush.msrb.mxu0 %v1521_v38 }
  0x30   :  { %390 = vmatpush.msra.mxu3 %v1547_v45 }
  0x31   :  { %408 = vmatpush.msrb.mxu0 %v1528_v39 }
  0x32   :  { %391 = vmatpush.msra.mxu3 %v1554_v46 }
  0x33   :  { %409 = vmatpush.msrb.mxu0 %v1533_v40 }
  0x34   :  { %453 = vmatpush.msrb.mxu3 %v1599_v21 }
  0x35   :  { %410 = vmatpush.msrb.mxu0 %v1540_v44 }
  0x37   :  { %411 = vmatpush.msrb.mxu0 %v1547_v45 }
  0x39   :  { %412 = vmatpush.msrb.mxu0 %v1554_v46 }
  0x3b   :  { %851 = vmatpush.msra.mxu0 %v1451_v26 }
  0x3d   :  { %852 = vmatpush.msra.mxu0 %v1458_v27 }
  0x3f   :  { %853 = vmatpush.msra.mxu0 %v1465_v28 }
  0x41   :  { %854 = vmatpush.msra.mxu0 %v1472_v29 }
  0x43   :  { %855 = vmatpush.msra.mxu0 %v1479_v30 }
  0x45   :  { %856 = vmatpush.msra.mxu0 %v1486_v31 }
  0x47   :  { %857 = vmatpush.msra.mxu0 %v1493_v32 }
  0x49   :  { %858 = vmatpush.msra.mxu0 %v1500_v33 }
  0x4b   :  { %859 = vmatpush.msra.mxu0 %v1507_v36 }
  0x4d   :  { %860 = vmatpush.msra.mxu0 %v1514_v37 }
  0x4f   :  { %861 = vmatpush.msra.mxu0 %v1521_v38 }
  0x51   :  { %862 = vmatpush.msra.mxu0 %v1528_v39 }
  0x53   :  { %863 = vmatpush.msra.mxu0 %v1533_v40 }
  0x55   :  { %864 = vmatpush.msra.mxu0 %v1540_v44 }
  0x57   :  { %865 = vmatpush.msra.mxu0 %v1547_v45 }
  0x59   :  { %866 = vmatpush.msra.mxu0 %v1554_v46 }
  0x97   :  { %v193_v34 = vpop.f32.mrf.mxu0  ;;  %v258_v35 = vpop.f32.mrf.mxu1 }
  0x98   :  { %v259_v50 = vadd.f32 %v258_v35, %v193_v34 }
  0x9e   :  { %v338_v41 = vpop.f32.mrf.mxu2 }
  0x9f   :  { %v195_v42 = vpop.f32.mrf.mxu0  ;;  %v260_v43 = vpop.f32.mrf.mxu1  ;;  %v1567_v55 = vadd.f32 %v338_v41, %v259_v50 }
  0xa0   :  { %v261_v51 = vadd.f32 %v260_v43, %v195_v42  ;;  %v1246_v42 = vld [vmem:[%s1792_s2 + $0x38] sm:$0xff] }
  0xa1   :  { %v363_v60 = vmul.f32 %v1567_v55, %v1567_v55  ;;  %724 = vmatpush.bf16.msrb.mxu2 %v1246_v42 }
  0xa6   :  { %v340_v47 = vpop.f32.mrf.mxu2 }
  0xa7   :  { %v198_v48 = vpop.f32.mrf.mxu0  ;;  %v263_v49 = vpop.f32.mrf.mxu1  ;;  %v1564_v54 = vadd.f32 %v340_v47, %v261_v51 }
  0xa8   :  { %v264_v52 = vadd.f32 %v263_v49, %v198_v48 }
  0xa9   :  { %v364_v59 = vmul.f32 %v1564_v54, %v1564_v54  ;;  %v354_v61 = vadd.f32 %v1564_v54, %v1567_v55 }
  0xab   :  { %v367_v1 = vadd.f32 %v364_v59, %v363_v60  ;;  %v353_v60 = vld [vmem:[%s1794_s6] sm:$0x1] }
  0xae   :  { %v343_v53 = vpop.f32.mrf.mxu2 }
  0xaf   :  { %v1569_v56 = vadd.f32 %v343_v53, %v264_v52  ;;  %v200_v57 = vpop.f32.mrf.mxu0  ;;  %v265_v58 = vpop.f32.mrf.mxu1  ;;  %v352_v52 = vld [vmem:[%s1793_s5] sm:$0x1] }
  0xb0   :  { %v266_v63 = vadd.f32 %v265_v58, %v200_v57 }
  0xb1   :  { %v365_v62 = vmul.f32 %v1569_v56, %v1569_v56  ;;  %v355_v3 = vadd.f32 %v354_v61, %v1569_v56 }
  0xb3   :  { %v368_v5 = vadd.f32 %v367_v1, %v365_v62  ;;  %v1262_v62 = vld [vmem:[%s1792_s2 + $0xb8] sm:$0xff]  ;;  %v1261_v1 = vld [vmem:[%s1792_s2 + $0xb0] sm:$0xff] }
  0xb6   :  { %v345_v0 = vpop.f32.mrf.mxu2 }
  0xb7   :  { %v1583_v4 = vadd.f32 %v345_v0, %v266_v63  ;;  %v1245_v63 = vld [vmem:[%s1792_s2 + $0x30] sm:$0xff]  ;;  %v1254_v0 = vld [vmem:[%s1792_s2 + $0x78] sm:$0xff] }
  0xb8   :  { %725 = vmatpush.bf16.msrb.mxu2 %v1245_v63  ;;  %657 = vmatpush.bf16.msrb.mxu1 %v1254_v0 }
  0xb9   :  { %v356_v6 = vadd.f32 %v355_v3, %v1583_v4  ;;  %v366_v7 = vmul.f32 %v1583_v4, %v1583_v4  ;;  %v1244_v3 = vld [vmem:[%s1792_s2 + $0x28] sm:$0xff] }
  0xbb   :  { %v357_v8 = vrot.slane %v356_v6, 4  ;;  %v369_v9 = vadd.f32 %v368_v5, %v366_v7  ;;  %v1253_v5 = vld [vmem:[%s1792_s2 + $0x70] sm:$0xff]  ;;  %v1243_v7 = vld [vmem:[%s1792_s2 + $0x20] sm:$0xff] }
  0xbc   :  { %726 = vmatpush.bf16.msrb.mxu2 %v1244_v3  ;;  %658 = vmatpush.bf16.msrb.mxu1 %v1253_v5 }
  0xbd   :  { %v370_v10 = vrot.slane %v369_v9, 4  ;;  %v358_v11 = vadd.f32 %v357_v8, %v356_v6  ;;  %v1260_v6 = vld [vmem:[%s1792_s2 + $0xa8] sm:$0xff] }
  0xbe   :  { %v1252_v8 = vld [vmem:[%s1792_s2 + $0x68] sm:$0xff] }
  0xbf   :  { %v359_v12 = vrot.slane %v358_v11, 2  ;;  %v371_v13 = vadd.f32 %v370_v10, %v369_v9  ;;  %v1259_v9 = vld [vmem:[%s1792_s2 + $0xa0] sm:$0xff]  ;;  %v1242_v10 = vld [vmem:[%s1792_s2 + $0x18] sm:$0xff] }
  0xc0   :  { %727 = vmatpush.bf16.msrb.mxu2 %v1243_v7  ;;  %659 = vmatpush.bf16.msrb.mxu1 %v1252_v8 }
  0xc1   :  { %v360_v14 = vadd.f32 %v359_v12, %v358_v11  ;;  %v372_v15 = vrot.slane %v371_v13, 2  ;;  %v1251_v11 = vld [vmem:[%s1792_s2 + $0x60] sm:$0xff]  ;;  %v1258_v12 = vld [vmem:[%s1792_s2 + $0x98] sm:$0xff] }
  0xc3   :  { %v361_v16 = vrot.slane %v360_v14, 1  ;;  %v373_v17 = vadd.f32 %v372_v15, %v371_v13  ;;  %v1241_v13 = vld [vmem:[%s1792_s2 + $0x10] sm:$0xff] }
  0xc4   :  { %728 = vmatpush.bf16.msrb.mxu2 %v1242_v10  ;;  %660 = vmatpush.bf16.msrb.mxu1 %v1251_v11  ;;  %v1257_v15 = vld [vmem:[%s1792_s2 + $0x90] sm:$0xff] }
  0xc5   :  { %v362_v18 = vadd.f32 %v361_v16, %v360_v14  ;;  %v374_v19 = vrot.slane %v373_v17, 1  ;;  %v1250_v14 = vld [vmem:[%s1792_s2 + $0x58] sm:$0xff]  ;;  %v1240_v16 = vld [vmem:[%s1792_s2 + $0x8] sm:$0xff] }
  0xc7   :  { %392 = vmatmul.f32.vlgmr.msra.gmra.mxu3 %v362_v18  ;;  %v375_v20 = vadd.f32 %v374_v19, %v373_v17  ;;  %v1249_v17 = vld [vmem:[%s1792_s2 + $0x50] sm:$0xff]  ;;  %v1256_v18 = vld [vmem:[%s1792_s2 + $0x88] sm:$0xff]  ;;  %v1239_v19 = vld [vmem:[%s1792_s2] sm:$0xff] }
  0xc8   :  { %476 = vmatpush.msra.mxu3 %v1599_v21  ;;  %729 = vmatpush.bf16.msrb.mxu2 %v1241_v13 }
  0xc9   :  { %413 = vmatmul.f32.vlgmr.msrb.gmra.mxu0 %v375_v20  ;;  %661 = vmatpush.bf16.msrb.mxu1 %v1250_v14  ;;  %v1248_v20 = vld [vmem:[%s1792_s2 + $0x48] sm:$0xff] }
  0xca   :  { %950 = vmatpush.msrb.mxu0 %v1599_v21 }
  0xcc   :  { %730 = vmatpush.bf16.msrb.mxu2 %v1240_v16 }
  0xcd   :  { %662 = vmatpush.bf16.msrb.mxu1 %v1249_v17 }
  0xd0   :  { %731 = vmatpush.bf16.msrb.mxu2 %v1239_v19 }
  0xd1   :  { %663 = vmatpush.bf16.msrb.mxu1 %v1248_v20 }
  0xd4   :  { %872 = vmatpush.msra.mxu2 %v1451_v26 }
  0xd6   :  { %873 = vmatpush.msra.mxu2 %v1458_v27 }
  0xd8   :  { %874 = vmatpush.msra.mxu2 %v1465_v28 }
  0xda   :  { %875 = vmatpush.msra.mxu2 %v1472_v29 }
  0xdc   :  { %876 = vmatpush.msra.mxu2 %v1479_v30 }
  0xde   :  { %877 = vmatpush.msra.mxu2 %v1486_v31 }
  0xe0   :  { %878 = vmatpush.msra.mxu2 %v1493_v32 }
  0xe2   :  { %879 = vmatpush.msra.mxu2 %v1500_v33 }
  0xe4   :  { %880 = vmatpush.msra.mxu2 %v1507_v36 }
  0xe6   :  { %881 = vmatpush.msra.mxu2 %v1514_v37 }
  0xe8   :  { %882 = vmatpush.msra.mxu2 %v1521_v38 }
  0xea   :  { %883 = vmatpush.msra.mxu2 %v1528_v39 }
  0xec   :  { %884 = vmatpush.msra.mxu2 %v1533_v40 }
  0xee   :  { %885 = vmatpush.msra.mxu2 %v1540_v44 }
  0xf0   :  { %886 = vmatpush.msra.mxu2 %v1547_v45 }
  0xf2   :  { %887 = vmatpush.msra.mxu2 %v1554_v46 }
 0x146   :  { %v414_v22 = vpop.f32.mrf.mxu0 }
 0x147   :  { %v417_v34 = vmul.f32 0.001953125, %v414_v22  ;;  %v1255_v22 = vld [vmem:[%s1792_s2 + $0x80] sm:$0xff] }
 0x14a   :  { %v393_v24 = vpop.f32.mrf.mxu3 }
 0x14b   :  { %v396_v25 = vmul.f32 0.001953125, %v393_v24  ;;  %v1247_v24 = vld [vmem:[%s1792_s2 + $0x40] sm:$0xff] }
 0x14c   :  { %664 = vmatpush.bf16.msrb.mxu1 %v1247_v24 }
 0x14d   :  { %v418_v35 = vmul.f32 %v396_v25, %v396_v25 }
 0x14f   :  { %v419_v41 = vsub.f32 %v417_v34, %v418_v35 }
 0x151   :  { %v420_v43 = vadd.f32 1e-05, %v419_v41 }
 0x153   :  { %1268 = vrsqrt.f32 %v420_v43  ;;  %vm427_vm9 = vweird.f32 %v420_v43 }
 0x159   :  { %v1269_v47 = vpop.eup %1268 }
 0x15a   :  { %v422_v48 = vmul.f32 %v1269_v47, %v420_v43  ;;  %vm428_vm8 = vweird.f32 %v1269_v47 }
 0x15b   :  { %vm429_vm10 = vmor %vm427_vm9, %vm428_vm8 }
 0x15c   :  { %v423_v49 = vmul.f32 %v1269_v47, %v422_v48 }
 0x15e   :  { %v424_v50 = vmul.f32 0.5, %v423_v49 }
 0x160   :  { %v425_v51 = vsub.f32 1.5, %v424_v50 }
 0x162   :  { %v426_v53 = vmul.f32 %v1269_v47, %v425_v51 }
 0x164   :  { %v430_v57 = vsel %vm429_vm10, %v1269_v47, %v426_v53 }
 0x165   :  { %v431_v58 = vmul.f32 %v430_v57, %v352_v52 }
 0x167   :  { %1107 = vmatmul.msk.f32.vlgmr.msrb.gmra.mxu3 %vm434_vm11, %v431_v58  ;;  %v432_v59 = vmul.f32 %v431_v58, %v396_v25 }
 0x168   :  { %804 = vmatpush.bf16.msrb.mxu3 %v1262_v62 }
 0x169   :  { %v433_v61 = vsub.f32 %v353_v60, %v432_v59 }
 0x16c   :  { %805 = vmatpush.bf16.msrb.mxu3 %v1261_v1 }
 0x16f   :  { %1108 = vmatmul.msk.f32.vlgmr.msra.gmra.mxu3 %vm434_vm11, %v433_v61 }
 0x170   :  { %806 = vmatpush.bf16.msrb.mxu3 %v1260_v6 }
 0x174   :  { %807 = vmatpush.bf16.msrb.mxu3 %v1259_v9 }
 0x178   :  { %808 = vmatpush.bf16.msrb.mxu3 %v1258_v12 }
 0x17c   :  { %809 = vmatpush.bf16.msrb.mxu3 %v1257_v15 }
 0x180   :  { %810 = vmatpush.bf16.msrb.mxu3 %v1256_v18 }
 0x184   :  { %811 = vmatpush.bf16.msrb.mxu3 %v1255_v22 }
 0x1ea   :  { %v455_v25 = vpop.f32.mrf.mxu3 }
 0x1eb   :  { %v481_v34 = vperm.slane %v455_v25, 0 }
 0x1ed   :  { %v482_v26 = vmul.f32 %v481_v34, %v1567_v55  ;;  %v483_v35 = vmul.f32 %v481_v34, %v1564_v54  ;;  %v484_v41 = vmul.f32 %v481_v34, %v1569_v56  ;;  %v485_v28 = vmul.f32 %v481_v34, %v1583_v4 }
 0x1f2   :  { %v478_v27 = vpop.f32.mrf.mxu3 }
 0x1f3   :  { %v486_v42 = vperm.slane %v478_v27, 0  ;;  %v973_v27 = vld [vmem:[%s1795_s3 + $0x20] sm:$0xf] }
 0x1f5   :  { %v487_v29 = vadd.f32 %v486_v42, %v482_v26  ;;  %v488_v43 = vadd.f32 %v486_v42, %v483_v35  ;;  %v489_v30 = vadd.f32 %v486_v42, %v484_v41  ;;  %v490_v47 = vadd.f32 %v486_v42, %v485_v28 }
 0x1f6   :  { %v995_v35 = vunpack.c.l.b16 %v973_v27 }
 0x1f7   :  { %v491_v31 = vmax.f32 %v487_v29, 0.0  ;;  %v492_v32 = vmax.f32 %v488_v43, 0.0  ;;  %v493_v48 = vmax.f32 %v489_v30, 0.0  ;;  %v494_v55 = vmax.f32 %v490_v47, 0.0 }
 0x1f8   :  { %v1000_v29 = vpack.c.b16 %v995_v35, %v995_v35 }
 0x1f9   :  { %v495_v54 = vpack.c.bf16 %v491_v31, %v491_v31  ;;  %v496_v49 = vpack.c.bf16 %v492_v32, %v492_v32  ;;  %v497_v56 = vpack.c.bf16 %v493_v48, %v493_v48  ;;  %v498_v50 = vpack.c.bf16 %v494_v55, %v494_v55  ;;  %v1266_v48 = vld [vmem:[%s1795_s3 + $0x18] sm:$0xff] }
 0x1fa   :  { %v1006_v31 = vsel %vm180_vm0, %v1000_v29, 0 }
 0x1fb   :  { %v503_v4 = vunpack.c.l.b16 %v495_v54  ;;  %v504_v33 = vunpack.c.l.b16 %v496_v49  ;;  %v505_v51 = vunpack.c.l.b16 %v497_v56  ;;  %v506_v52 = vunpack.c.l.b16 %v498_v50  ;;  %1011 = vmatpush.bf16.msra.mxu1 %v1006_v31 }
 0x1fd   :  { %v507_v53 = vpack.c.b16 %v504_v33, %v503_v4  ;;  %v508_v36 = vpack.c.b16 %v506_v52, %v505_v51 }
 0x1ff   :  { %v510_v57 = vshrl.u32 %v507_v53, 16  ;;  %v513_v58 = vshll.u32 %v507_v53, 16  ;;  %v517_v59 = vshrl.u32 %v508_v36, 16  ;;  %v520_v1 = vshll.u32 %v508_v36, 16  ;;  %1012 = vmatpush.bf16.msra.mxu1 %v1266_v48 }
 0x201   :  { %v512_v38 = vrot.slane %v510_v57, 7  ;;  %v519_v44 = vrot.slane %v517_v59, 7 }
 0x203   :  { %v515_v60 = vor.u32 %v513_v58, %v512_v38  ;;  %v532_v39 = vsel %vm1702_vm14, %v512_v38, 0  ;;  %v522_v46 = vor.u32 %v520_v1, %v519_v44  ;;  %v533_v11 = vsel %vm1702_vm14, %v519_v44, 0 }
 0x204   :  { %v749_v63 = vrot.slane %v532_v39, 1  ;;  %v591_v0 = vshll.u32 %v532_v39, 16  ;;  %v752_v13 = vrot.slane %v533_v11, 1  ;;  %v603_v15 = vshll.u32 %v533_v11, 16 }
 0x205   :  { %v530_v40 = vsel %vm1702_vm14, 0, %v515_v60  ;;  %v531_v9 = vsel %vm1702_vm14, 0, %v522_v46 }
 0x206   :  { %v586_v61 = vshll.u32 %v530_v40, 16  ;;  %732 = vmatmul.bf16.vlgmr.msrb.gmra.mxu2 %v530_v40  ;;  %v748_v62 = vrot.slane %v530_v40, 1  ;;  %v584_v45 = vshrl.u32 %v530_v40, 16  ;;  %v593_v7 = vrot.slane %v591_v0, 1 }
 0x207   :  { %927 = vmatpush.msrb.mxu2 %v1599_v21  ;;  %v598_v10 = vshll.u32 %v531_v9, 16  ;;  %v751_v21 = vrot.slane %v531_v9, 1  ;;  %v596_v14 = vshrl.u32 %v531_v9, 16  ;;  %v605_v18 = vrot.slane %v603_v15, 1 }
 0x208   :  { %v588_v3 = vrot.slane %v586_v61, 1  ;;  %v750_v5 = vsel %vm747_vm15, %v748_v62, %v749_v63 }
 0x209   :  { %812 = vmatmul.bf16.vlgmr.msrb.gmra.mxu3 %v750_v5  ;;  %v600_v12 = vrot.slane %v598_v10, 1  ;;  %v753_v16 = vsel %vm747_vm15, %v751_v21, %v752_v13 }
 0x20a   :  { %v589_v6 = vor.u32 %v588_v3, %v584_v45 }
 0x20b   :  { %v601_v17 = vor.u32 %v600_v12, %v596_v14 }
 0x20c   :  { %v594_v8 = vsel %vm582_vm1, %v589_v6, %v593_v7  ;;  %v1265_v6 = vld [vmem:[%s1795_s3 + $0x10] sm:$0xff]  ;;  %v1264_v7 = vld [vmem:[%s1795_s3 + $0x8] sm:$0xff] }
 0x20d   :  { %665 = vmatmul.bf16.vlgmr.msrb.gmra.mxu1 %v594_v8  ;;  %v606_v19 = vsel %vm582_vm1, %v601_v17, %v605_v18  ;;  %v1263_v8 = vld [vmem:[%s1795_s3] sm:$0xff] }
 0x20e   :  { %1013 = vmatpush.bf16.msra.mxu1 %v1265_v6 }
 0x212   :  { %1014 = vmatpush.bf16.msra.mxu1 %v1264_v7 }
 0x216   :  { %737 = vmatmul.bf16.gmra.mxu2 %v531_v9  ;;  %1015 = vmatpush.bf16.msra.mxu1 %v1263_v8 }
 0x219   :  { %817 = vmatmul.bf16.gmra.mxu3 %v753_v16 }
 0x21d   :  { %670 = vmatmul.bf16.gmra.mxu1 %v606_v19 }
 0x22d   :  { %1223 = vmatmul.msk.bf16.vlgmr.msra.gmra.mxu1 %vm173_vm7, %v1421_v2  ;;  %v827_v2 = vld [vmem:[%s1797_s7] sm:$0x1] }
 0x23d   :  { %1224 = vmatmul.msk.bf16.gmra.mxu1 %vm173_vm7, %v1439_v23 }
 0x289   :  { %v733_v20 = vpop.f32.mrf.mxu2 }
 0x28a   :  { %v666_v22 = vpop.f32.mrf.mxu1 }
 0x28b   :  { %v734_v43 = vadd.f32 %v733_v20, %v666_v22 }
 0x28c   :  { %v813_v24 = vpop.f32.mrf.mxu3 }
 0x28d   :  { %v1730_v55 = vadd.f32 %v813_v24, %v734_v43  ;;  %v828_v24 = vld [vmem:[%s1798_s8] sm:$0x1] }
 0x28f   :  { %v838_v4 = vmul.f32 %v1730_v55, %v1730_v55 }
 0x291   :  { %v735_v25 = vpop.f32.mrf.mxu2 }
 0x292   :  { %v668_v34 = vpop.f32.mrf.mxu1 }
 0x293   :  { %v736_v41 = vadd.f32 %v735_v25, %v668_v34 }
 0x294   :  { %v815_v26 = vpop.f32.mrf.mxu3 }
 0x295   :  { %v1725_v32 = vadd.f32 %v815_v26, %v736_v41 }
 0x297   :  { %v839_v49 = vmul.f32 %v1725_v32, %v1725_v32  ;;  %v829_v33 = vadd.f32 %v1725_v32, %v1730_v55 }
 0x299   :  { %v738_v28 = vpop.f32.mrf.mxu2  ;;  %v842_v36 = vadd.f32 %v839_v49, %v838_v4 }
 0x29a   :  { %v671_v42 = vpop.f32.mrf.mxu1 }
 0x29b   :  { %v739_v30 = vadd.f32 %v738_v28, %v671_v42  ;;  %v1267_v28 = vld [vmem:[%s1796_s4] ss:$0 sm:$0xff] }
 0x29c   :  { %v818_v47 = vpop.f32.mrf.mxu3 }
 0x29d   :  { %v1732_v54 = vadd.f32 %v818_v47, %v739_v30 }
 0x29f   :  { %v840_v51 = vmul.f32 %v1732_v54, %v1732_v54  ;;  %v830_v57 = vadd.f32 %v829_v33, %v1732_v54 }
 0x2a1   :  { %v740_v56 = vpop.f32.mrf.mxu2  ;;  %v843_v38 = vadd.f32 %v842_v36, %v840_v51 }
 0x2a2   :  { %v673_v50 = vpop.f32.mrf.mxu1 }
 0x2a3   :  { %v741_v52 = vadd.f32 %v740_v56, %v673_v50 }
 0x2a4   :  { %v820_v53 = vpop.f32.mrf.mxu3 }
 0x2a5   :  { %v1743_v37 = vadd.f32 %v820_v53, %v741_v52 }
 0x2a7   :  { %v831_v58 = vadd.f32 %v830_v57, %v1743_v37  ;;  %v841_v59 = vmul.f32 %v1743_v37, %v1743_v37 }
 0x2a9   :  { %v832_v60 = vrot.slane %v831_v58, 4  ;;  %v844_v39 = vadd.f32 %v843_v38, %v841_v59 }
 0x2aa   :  { %v1017_v26 = vpop.f32.mrf.mxu1 }
 0x2ab   :  { %v833_v40 = vadd.f32 %v832_v60, %v831_v58  ;;  %v845_v44 = vrot.slane %v844_v39, 4  ;;  %v1018_v56 = vadd.f32 %v1267_v28, %v1017_v26 }
 0x2ad   :  { %v834_v61 = vrot.slane %v833_v40, 2  ;;  %v846_v62 = vadd.f32 %v845_v44, %v844_v39 }
 0x2af   :  { %v835_v63 = vadd.f32 %v834_v61, %v833_v40  ;;  %v847_v0 = vrot.slane %v846_v62, 2 }
 0x2b1   :  { %v836_v1 = vrot.slane %v835_v63, 1  ;;  %v848_v45 = vadd.f32 %v847_v0, %v846_v62 }
 0x2b2   :  { %v1019_v27 = vpop.f32.mrf.mxu1 }
 0x2b3   :  { %v837_v3 = vadd.f32 %v836_v1, %v835_v63  ;;  %v849_v5 = vrot.slane %v848_v45, 1  ;;  %v1020_v50 = vadd.f32 %v1267_v28, %v1019_v27 }
 0x2b5   :  { %867 = vmatmul.f32.vlgmr.msra.gmra.mxu0 %v837_v3  ;;  %v850_v46 = vadd.f32 %v849_v5, %v848_v45 }
 0x2b7   :  { %888 = vmatmul.f32.vlgmr.msra.gmra.mxu2 %v850_v46 }
 0x2ba   :  { %v1022_v35 = vpop.f32.mrf.mxu1 }
 0x2bb   :  { %v1023_v4 = vadd.f32 %v1267_v28, %v1022_v35 }
 0x2c2   :  { %v1024_v29 = vpop.f32.mrf.mxu1 }
 0x2c3   :  { %v1025_v33 = vadd.f32 %v1267_v28, %v1024_v29 }
 0x332   :  { %v868_v9 = vpop.f32.mrf.mxu0 }
 0x333   :  { %v871_v10 = vmul.f32 0.001953125, %v868_v9 }
 0x335   :  { %v893_v21 = vmul.f32 %v871_v10, %v871_v10 }
 0x33a   :  { %v889_v11 = vpop.f32.mrf.mxu2 }
 0x33b   :  { %v892_v12 = vmul.f32 0.001953125, %v889_v11 }
 0x33d   :  { %v894_v13 = vsub.f32 %v892_v12, %v893_v21 }
 0x33f   :  { %v895_v14 = vadd.f32 1e-05, %v894_v13 }
 0x341   :  { %1270 = vrsqrt.f32 %v895_v14  ;;  %vm902_vm2 = vweird.f32 %v895_v14 }
 0x347   :  { %v1271_v15 = vpop.eup %1270 }
 0x348   :  { %v897_v16 = vmul.f32 %v1271_v15, %v895_v14  ;;  %vm903_vm0 = vweird.f32 %v1271_v15 }
 0x349   :  { %vm904_vm3 = vmor %vm902_vm2, %vm903_vm0 }
 0x34a   :  { %v898_v17 = vmul.f32 %v1271_v15, %v897_v16 }
 0x34c   :  { %v899_v18 = vmul.f32 0.5, %v898_v17 }
 0x34e   :  { %v900_v19 = vsub.f32 1.5, %v899_v18 }
 0x350   :  { %v901_v20 = vmul.f32 %v1271_v15, %v900_v19 }
 0x352   :  { %v905_v23 = vsel %vm904_vm3, %v1271_v15, %v901_v20 }
 0x353   :  { %v906_v22 = vmul.f32 %v905_v23, %v827_v2 }
 0x355   :  { %v907_v25 = vmul.f32 %v906_v22, %v871_v10  ;;  %1205 = vmatmul.msk.f32.vlgmr.msrb.gmra.mxu2 %vm434_vm11, %v906_v22 }
 0x357   :  { %v908_v34 = vsub.f32 %v828_v24, %v907_v25 }
 0x359   :  { %1206 = vmatmul.msk.f32.vlgmr.msrb.gmra.mxu0 %vm434_vm11, %v908_v34 }
 0x3d6   :  { %v952_v41 = vpop.f32.mrf.mxu0 }
 0x3d7   :  { %v960_v30 = vperm.slane %v952_v41, 0 }
 0x3d8   :  { %v929_v42 = vpop.f32.mrf.mxu2 }
 0x3d9   :  { %v955_v43 = vperm.slane %v929_v42, 0 }
 0x3db   :  { %v956_v47 = vmul.f32 %v955_v43, %v1730_v55  ;;  %v957_v31 = vmul.f32 %v955_v43, %v1725_v32  ;;  %v958_v48 = vmul.f32 %v955_v43, %v1732_v54  ;;  %v959_v49 = vmul.f32 %v955_v43, %v1743_v37 }
 0x3dd   :  { %v961_v51 = vadd.f32 %v960_v30, %v956_v47  ;;  %v962_v52 = vadd.f32 %v960_v30, %v957_v31  ;;  %v963_v53 = vadd.f32 %v960_v30, %v958_v48  ;;  %v964_v36 = vadd.f32 %v960_v30, %v959_v49 }
 0x3df   :  { %v1027_v57 = vadd.f32 %v1018_v56, %v961_v51  ;;  %v1028_v38 = vadd.f32 %v1020_v50, %v962_v52  ;;  %v1029_v58 = vadd.f32 %v1023_v4, %v963_v53  ;;  %v1030_v59 = vadd.f32 %v1025_v33, %v964_v36 }
 0x3e1   :  { %v1031_v60 = vmax.f32 %v1027_v57, 0.0  ;;  %v1032_v55 = vmax.f32 %v1028_v38, 0.0  ;;  %v1033_v39 = vmax.f32 %v1029_v58, 0.0  ;;  %v1034_v32 = vmax.f32 %v1030_v59, 0.0 }
 0x3e3   :  { %1035 = vst [vmem:[%s1799_s11] sm:$0xff] %v1031_v60 }
 0x3e4   :  { %1036 = vst [vmem:[%s1799_s11 + $0x8] sm:$0xff] %v1032_v55 }
 0x3e5   :  { %1037 = vst [vmem:[%s1799_s11 + $0x10] sm:$0xff] %v1033_v39 }
 0x3e6   :  { %1038 = vst [vmem:[%s1799_s11 + $0x18] sm:$0xff] %v1034_v32 }

</bundles_post_ra>
